<compile_context>
chip_gen: v6e
topology: v6e:2x2x1
jax: 0.10.0
libtpu: 0.0.40
codegen_flags: <defaults>
</compile_context>

<pallas_src>
import jax
import jax.numpy as jnp
import numpy as np
from jax.experimental import pallas as pl
from jax.experimental.pallas import tpu as pltpu


def _seg_kernel(xr_ref, o_ref):
    """Segment Dt channels of one batch element.

    xr_ref: (1, Dt, R, P)  raw signal rows (row r = x[r*P:(r+1)*P]; the tail
                           row is zero-filled when L % P != 0)
    o_ref : (1, Dt, K, S)  K = 2*P overlapping chunks, chunk index s on lanes

    out[k, s] = padded[s*P + k]  =>
      top half    (k <  P): col 0 zero, cols 1..R = rows 0..R-1, cols > R zero
      bottom half (k >= P): cols 0..R-1 = rows 0..R-1, cols >= R zero
    """
    _, Dt, R, P = xr_ref.shape
    _, _, K, S = o_ref.shape
    dt = o_ref.dtype

    # Pad-derived zero columns (identical for every channel -> bulk stores;
    # at most 3 narrow columns per half, negligible next to the data stores).
    o_ref[0, :, 0:P, 0:1] = jnp.zeros((Dt, P, 1), dt)
    if S - R - 1 > 0:
        o_ref[0, :, 0:P, R + 1:S] = jnp.zeros((Dt, P, S - R - 1), dt)
    if S - R > 0:
        o_ref[0, :, P:K, R:S] = jnp.zeros((Dt, P, S - R), dt)

    # Signal-derived columns: out[0:P, 1+r] = out[P:K, r] = x_row[r]^T.
    # One 2-D XLU transpose per channel, reused by both stores.
    for d in range(Dt):                       # static unroll, Dt kept small
        t = xr_ref[0, d].T                    # (P, R) transpose (XLU)
        o_ref[0, d, P:K, 0:R] = t             # lane-aligned store
        o_ref[0, d, 0:P, 1:R + 1] = t         # static +1-lane offset store


def segmentation(x, K):
    """JAX/Pallas equivalent of Segementation(K).forward(x).

    x: (B, N, L)  ->  (out (B, N, K, S), gap)
    """
    P = K // 2
    B, D, L = x.shape
    gap = int(K - L % P)                      # matches torch (== K when L % P == 0)
    Lp = L + gap + 2 * P
    # torch's .view(B, D, -1, K) requires this; mirror the constraint.
    assert Lp % P == 0 and (Lp - P) % K == 0, "L incompatible with torch view"
    S = Lp // P - 1

    # Rows of raw samples; only a (possibly empty) tiny tail needs XLA padding.
    # TODO(synk): when L % P != 0 this tail pad is one extra XLA copy of x;
    # folding it into the kernel would need a non-divisible lane reshape.
    R = -(-L // P)                            # ceil(L / P)
    tail = R * P - L
    xr = x if tail == 0 else jnp.pad(x, ((0, 0), (0, 0), (0, tail)))
    xr = xr.reshape(B, D, R, P)               # metadata-only split of last dim

    # Channel tile: largest divisor of D whose double-buffered in+out blocks
    # plus per-channel transpose intermediates stay inside a ~24 MiB VMEM
    # budget (fits 32 MiB scoped default and v7x's 64 MiB physical), with a
    # modest unroll cap to bound code size / compile time.
    itemsize = jnp.dtype(x.dtype).itemsize
    per_chan_vmem = (3 * R * P + 2 * K * S) * itemsize
    budget = 24 * 1024 * 1024
    max_dt = int(max(1, min(budget // max(per_chan_vmem, 1), 32)))
    Dt = 1
    for cand in range(1, D + 1):
        if D % cand == 0 and cand <= max_dt:
            Dt = cand

    out = pl.pallas_call(
        _seg_kernel,
        out_shape=jax.ShapeDtypeStruct((B, D, K, S), x.dtype),
        grid=(B, D // Dt),
        in_specs=[pl.BlockSpec((1, Dt, R, P), lambda b, c: (b, c, 0, 0))],
        out_specs=pl.BlockSpec((1, Dt, K, S), lambda b, c: (b, c, 0, 0)),
        compiler_params=pltpu.CompilerParams(
            dimension_semantics=("parallel", "parallel"),
            vmem_limit_bytes=32 * 1024 * 1024),
        cost_estimate=pl.CostEstimate(
            flops=0, transcendentals=0,
            bytes_accessed=B * D * (R * P + K * S) * itemsize),
    )(xr)
    return out, gap


def _reference(x, K):
    """NumPy port of the PyTorch forward (ground truth)."""
    P = K // 2
    B, D, L = x.shape
    gap = K - L % P
    xp = np.concatenate(
        [np.zeros((B, D, P), np.float32),
         np.asarray(x, np.float32),
         np.zeros((B, D, gap), np.float32),
         np.zeros((B, D, P), np.float32)], axis=2)
    left = xp[:, :, :-P].reshape(B, D, -1, K)
    right = xp[:, :, P:].reshape(B, D, -1, K)
    y = np.concatenate([left, right], axis=3).reshape(B, D, -1, K)
    return np.swapaxes(y, 2, 3), gap


if __name__ == "__main__":
    key = jax.random.PRNGKey(0)
    B, N, K = 2, 4, 8
    # L = 12 exercises the no-pad fast path (L % P == 0);
    # L = 14 exercises the partial tail-row path (L % P != 0).
    for L in (12, 14):
        x = jax.random.normal(jax.random.fold_in(key, L), (B, N, L),
                              dtype=jnp.float32)
        out, gap = segmentation(x, K)
        out = jax.block_until_ready(out)

        ref, ref_gap = _reference(np.asarray(x), K)
        assert gap == ref_gap, (gap, ref_gap)
        assert out.shape == ref.shape, (out.shape, ref.shape)
        np.testing.assert_allclose(np.asarray(out), ref, rtol=0.0, atol=0.0)

    print("KERNEL_OK")
</pallas_src>

<mosaic_0001>
module attributes {stable_mosaic.version = 11 : i64} {
  func.func @_seg_kernel(%arg0: i32, %arg1: i32, %arg2: memref<1x4x3x4xf32, #tpu.memory_space<vmem>>, %arg3: memref<1x4x8x6xf32, #tpu.memory_space<vmem>>) attributes {dimension_semantics = [#tpu.dimension_semantics<parallel>, #tpu.dimension_semantics<parallel>], iteration_bounds = array<i64: 2, 1>, scalar_prefetch = 0 : i64, scratch_operands = 0 : i64, tpu.core_type = #tpu.core_type<tc>, window_params = [{transform_indices = @transform_0, window_bounds = array<i64: 1, 4, 3, 4>}, {transform_indices = @transform_1, window_bounds = array<i64: 1, 4, 8, 6>}]} {
    %cst = arith.constant 0.000000e+00 : f32
    %0 = vector.broadcast %cst : f32 to vector<4x4x1xf32>
    %c0 = arith.constant 0 : index
    %c0_0 = arith.constant 0 : index
    %c0_1 = arith.constant 0 : index
    %c0_2 = arith.constant 0 : index
    %1 = vector.load %arg3[%c0, %c0_0, %c0_1, %c0_2] : memref<1x4x8x6xf32, #tpu.memory_space<vmem>>, vector<1x4x4x1xf32>
    %2 = vector.shape_cast %1 : vector<1x4x4x1xf32> to vector<4x4x1xf32>
    %3 = vector.shape_cast %0 : vector<4x4x1xf32> to vector<1x4x4x1xf32>
    tpu.vector_store %arg3[%c0, %c0_0, %c0_1, %c0_2], %3 {strides = array<i32>} : memref<1x4x8x6xf32, #tpu.memory_space<vmem>>, vector<1x4x4x1xf32>,
    %cst_3 = arith.constant 0.000000e+00 : f32
    %4 = vector.broadcast %cst_3 : f32 to vector<4x4x2xf32>
    %c0_4 = arith.constant 0 : index
    %c0_5 = arith.constant 0 : index
    %c0_6 = arith.constant 0 : index
    %c4 = arith.constant 4 : index
    %5 = vector.load %arg3[%c0_4, %c0_5, %c0_6, %c4] : memref<1x4x8x6xf32, #tpu.memory_space<vmem>>, vector<1x4x4x2xf32>
    %6 = vector.shape_cast %5 : vector<1x4x4x2xf32> to vector<4x4x2xf32>
    %7 = vector.shape_cast %4 : vector<4x4x2xf32> to vector<1x4x4x2xf32>
    tpu.vector_store %arg3[%c0_4, %c0_5, %c0_6, %c4], %7 {strides = array<i32>} : memref<1x4x8x6xf32, #tpu.memory_space<vmem>>, vector<1x4x4x2xf32>,
    %cst_7 = arith.constant 0.000000e+00 : f32
    %8 = vector.broadcast %cst_7 : f32 to vector<4x4x3xf32>
    %c0_8 = arith.constant 0 : index
    %c0_9 = arith.constant 0 : index
    %c4_10 = arith.constant 4 : index
    %c3 = arith.constant 3 : index
    %9 = vector.load %arg3[%c0_8, %c0_9, %c4_10, %c3] : memref<1x4x8x6xf32, #tpu.memory_space<vmem>>, vector<1x4x4x3xf32>
    %10 = vector.shape_cast %9 : vector<1x4x4x3xf32> to vector<4x4x3xf32>
    %11 = vector.shape_cast %8 : vector<4x4x3xf32> to vector<1x4x4x3xf32>
    tpu.vector_store %arg3[%c0_8, %c0_9, %c4_10, %c3], %11 {strides = array<i32>} : memref<1x4x8x6xf32, #tpu.memory_space<vmem>>, vector<1x4x4x3xf32>,
    %c0_11 = arith.constant 0 : index
    %c0_12 = arith.constant 0 : index
    %c0_13 = arith.constant 0 : index
    %c0_14 = arith.constant 0 : index
    %12 = vector.load %arg2[%c0_11, %c0_12, %c0_13, %c0_14] : memref<1x4x3x4xf32, #tpu.memory_space<vmem>>, vector<1x1x3x4xf32>
    %13 = vector.shape_cast %12 : vector<1x1x3x4xf32> to vector<3x4xf32>
    %14 = tpu.transpose %13, [1, 0] : vector<3x4xf32> -> vector<4x3xf32>
    %c0_15 = arith.constant 0 : index
    %c0_16 = arith.constant 0 : index
    %c4_17 = arith.constant 4 : index
    %c0_18 = arith.constant 0 : index
    %15 = vector.load %arg3[%c0_15, %c0_16, %c4_17, %c0_18] : memref<1x4x8x6xf32, #tpu.memory_space<vmem>>, vector<1x1x4x3xf32>
    %16 = vector.shape_cast %15 : vector<1x1x4x3xf32> to vector<4x3xf32>
    %17 = vector.shape_cast %14 : vector<4x3xf32> to vector<1x1x4x3xf32>
    tpu.vector_store %arg3[%c0_15, %c0_16, %c4_17, %c0_18], %17 {strides = array<i32>} : memref<1x4x8x6xf32, #tpu.memory_space<vmem>>, vector<1x1x4x3xf32>,
    %c0_19 = arith.constant 0 : index
    %c0_20 = arith.constant 0 : index
    %c0_21 = arith.constant 0 : index
    %c1 = arith.constant 1 : index
    %18 = vector.load %arg3[%c0_19, %c0_20, %c0_21, %c1] : memref<1x4x8x6xf32, #tpu.memory_space<vmem>>, vector<1x1x4x3xf32>
    %19 = vector.shape_cast %18 : vector<1x1x4x3xf32> to vector<4x3xf32>
    %20 = vector.shape_cast %14 : vector<4x3xf32> to vector<1x1x4x3xf32>
    tpu.vector_store %arg3[%c0_19, %c0_20, %c0_21, %c1], %20 {strides = array<i32>} : memref<1x4x8x6xf32, #tpu.memory_space<vmem>>, vector<1x1x4x3xf32>,
    %c0_22 = arith.constant 0 : index
    %c1_23 = arith.constant 1 : index
    %c0_24 = arith.constant 0 : index
    %c0_25 = arith.constant 0 : index
    %21 = vector.load %arg2[%c0_22, %c1_23, %c0_24, %c0_25] : memref<1x4x3x4xf32, #tpu.memory_space<vmem>>, vector<1x1x3x4xf32>
    %22 = vector.shape_cast %21 : vector<1x1x3x4xf32> to vector<3x4xf32>
    %23 = tpu.transpose %22, [1, 0] : vector<3x4xf32> -> vector<4x3xf32>
    %c0_26 = arith.constant 0 : index
    %c1_27 = arith.constant 1 : index
    %c4_28 = arith.constant 4 : index
    %c0_29 = arith.constant 0 : index
    %24 = vector.load %arg3[%c0_26, %c1_27, %c4_28, %c0_29] : memref<1x4x8x6xf32, #tpu.memory_space<vmem>>, vector<1x1x4x3xf32>
    %25 = vector.shape_cast %24 : vector<1x1x4x3xf32> to vector<4x3xf32>
    %26 = vector.shape_cast %23 : vector<4x3xf32> to vector<1x1x4x3xf32>
    tpu.vector_store %arg3[%c0_26, %c1_27, %c4_28, %c0_29], %26 {strides = array<i32>} : memref<1x4x8x6xf32, #tpu.memory_space<vmem>>, vector<1x1x4x3xf32>,
    %c0_30 = arith.constant 0 : index
    %c1_31 = arith.constant 1 : index
    %c0_32 = arith.constant 0 : index
    %c1_33 = arith.constant 1 : index
    %27 = vector.load %arg3[%c0_30, %c1_31, %c0_32, %c1_33] : memref<1x4x8x6xf32, #tpu.memory_space<vmem>>, vector<1x1x4x3xf32>
    %28 = vector.shape_cast %27 : vector<1x1x4x3xf32> to vector<4x3xf32>
    %29 = vector.shape_cast %23 : vector<4x3xf32> to vector<1x1x4x3xf32>
    tpu.vector_store %arg3[%c0_30, %c1_31, %c0_32, %c1_33], %29 {strides = array<i32>} : memref<1x4x8x6xf32, #tpu.memory_space<vmem>>, vector<1x1x4x3xf32>,
    %c0_34 = arith.constant 0 : index
    %c2 = arith.constant 2 : index
    %c0_35 = arith.constant 0 : index
    %c0_36 = arith.constant 0 : index
    %30 = vector.load %arg2[%c0_34, %c2, %c0_35, %c0_36] : memref<1x4x3x4xf32, #tpu.memory_space<vmem>>, vector<1x1x3x4xf32>
    %31 = vector.shape_cast %30 : vector<1x1x3x4xf32> to vector<3x4xf32>
    %32 = tpu.transpose %31, [1, 0] : vector<3x4xf32> -> vector<4x3xf32>
    %c0_37 = arith.constant 0 : index
    %c2_38 = arith.constant 2 : index
    %c4_39 = arith.constant 4 : index
    %c0_40 = arith.constant 0 : index
    %33 = vector.load %arg3[%c0_37, %c2_38, %c4_39, %c0_40] : memref<1x4x8x6xf32, #tpu.memory_space<vmem>>, vector<1x1x4x3xf32>
    %34 = vector.shape_cast %33 : vector<1x1x4x3xf32> to vector<4x3xf32>
    %35 = vector.shape_cast %32 : vector<4x3xf32> to vector<1x1x4x3xf32>
    tpu.vector_store %arg3[%c0_37, %c2_38, %c4_39, %c0_40], %35 {strides = array<i32>} : memref<1x4x8x6xf32, #tpu.memory_space<vmem>>, vector<1x1x4x3xf32>,
    %c0_41 = arith.constant 0 : index
    %c2_42 = arith.constant 2 : index
    %c0_43 = arith.constant 0 : index
    %c1_44 = arith.constant 1 : index
    %36 = vector.load %arg3[%c0_41, %c2_42, %c0_43, %c1_44] : memref<1x4x8x6xf32, #tpu.memory_space<vmem>>, vector<1x1x4x3xf32>
    %37 = vector.shape_cast %36 : vector<1x1x4x3xf32> to vector<4x3xf32>
    %38 = vector.shape_cast %32 : vector<4x3xf32> to vector<1x1x4x3xf32>
    tpu.vector_store %arg3[%c0_41, %c2_42, %c0_43, %c1_44], %38 {strides = array<i32>} : memref<1x4x8x6xf32, #tpu.memory_space<vmem>>, vector<1x1x4x3xf32>,
    %c0_45 = arith.constant 0 : index
    %c3_46 = arith.constant 3 : index
    %c0_47 = arith.constant 0 : index
    %c0_48 = arith.constant 0 : index
    %39 = vector.load %arg2[%c0_45, %c3_46, %c0_47, %c0_48] : memref<1x4x3x4xf32, #tpu.memory_space<vmem>>, vector<1x1x3x4xf32>
    %40 = vector.shape_cast %39 : vector<1x1x3x4xf32> to vector<3x4xf32>
    %41 = tpu.transpose %40, [1, 0] : vector<3x4xf32> -> vector<4x3xf32>
    %c0_49 = arith.constant 0 : index
    %c3_50 = arith.constant 3 : index
    %c4_51 = arith.constant 4 : index
    %c0_52 = arith.constant 0 : index
    %42 = vector.load %arg3[%c0_49, %c3_50, %c4_51, %c0_52] : memref<1x4x8x6xf32, #tpu.memory_space<vmem>>, vector<1x1x4x3xf32>
    %43 = vector.shape_cast %42 : vector<1x1x4x3xf32> to vector<4x3xf32>
    %44 = vector.shape_cast %41 : vector<4x3xf32> to vector<1x1x4x3xf32>
    tpu.vector_store %arg3[%c0_49, %c3_50, %c4_51, %c0_52], %44 {strides = array<i32>} : memref<1x4x8x6xf32, #tpu.memory_space<vmem>>, vector<1x1x4x3xf32>,
    %c0_53 = arith.constant 0 : index
    %c3_54 = arith.constant 3 : index
    %c0_55 = arith.constant 0 : index
    %c1_56 = arith.constant 1 : index
    %45 = vector.load %arg3[%c0_53, %c3_54, %c0_55, %c1_56] : memref<1x4x8x6xf32, #tpu.memory_space<vmem>>, vector<1x1x4x3xf32>
    %46 = vector.shape_cast %45 : vector<1x1x4x3xf32> to vector<4x3xf32>
    %47 = vector.shape_cast %41 : vector<4x3xf32> to vector<1x1x4x3xf32>
    tpu.vector_store %arg3[%c0_53, %c3_54, %c0_55, %c1_56], %47 {strides = array<i32>} : memref<1x4x8x6xf32, #tpu.memory_space<vmem>>, vector<1x1x4x3xf32>,
    return
  }
  func.func @transform_0(%arg0: i32, %arg1: i32) -> (i32, i32, i32, i32) {
    %c0_i32 = arith.constant 0 : i32
    %c0_i32_0 = arith.constant 0 : i32
    %c0_i32_1 = arith.constant 0 : i32
    return %arg0, %arg1, %c0_i32, %c0_i32_0 : i32, i32, i32, i32
  }
  func.func @transform_1(%arg0: i32, %arg1: i32) -> (i32, i32, i32, i32) {
    %c0_i32 = arith.constant 0 : i32
    %c0_i32_0 = arith.constant 0 : i32
    %c0_i32_1 = arith.constant 0 : i32
    return %arg0, %arg1, %c0_i32, %c0_i32_0 : i32, i32, i32, i32
  }
}

</mosaic_0001>

<bundles_post_ra>
// kernel: tpu_custom_call.1
= control target key start
LH: loop header
LB: loop body
LE: loop exit
PB: predicated region body
PF: predicated region fallthrough
CT: control target
= control target key end

     0   :  { %s506_s6 = smov 0   ;;  %s508_s7 = smov 0   ;;  %s561_s0 = inlined_call_operand.vmem [shape: f32[2,4,3,4], index: 0, kind: input, shape index: {}]   ;;  %s562_s1 = inlined_call_operand.vmem [shape: f32[2,4,8,6], index: 1, kind: output, shape index: {}]  }
   0x1   :  { %s510_s8 = smov 0  }
   0x2 LB: > { %s23_s9 = sadd.s32 1, %s488_s7  ;;  %p426_p0 = scmp.ge.s32.totalorder %s492_s8, 1  ;;  %s492_s8 = sphi %s510_s8, %s11_s8   ;;  %s488_s7 = sphi %s508_s7, %s564_s7   ;;  %s484_s6 = sphi %s506_s6, %s563_s6  }
   0x3   : > { %p25_p1 = scmp.ge.s32.totalorder %s23_s9, 2  ;;  %p108_p2 = scmp.lt.s32.totalorder %s492_s8, 3 }
   0x5   : > { %s566_s9 = smov (%p25_p1, %s23_s9), 0  ;;  %p109_p3 = pnand %p426_p0, %p108_p2 }
   0x6   : > { %p137_p4 = scmp.lt.s32.totalorder (!%p109_p3), %s484_s6, 1  ;;  %s495_s18 = smov (!%p109_p3), 1  }
   0x7   : > { %112 = sbr.rel (%p109_p3) target bundleno = 261 (0x105), region = 24 }
   0xc   : > { %s568_s6 = smov (!%p137_p4, %s484_s6), 1  ;;  %vm166_vm0 = vcmask 44056   ;;  %v494_v2 = vmov 0.0   ;;  %vm156_vm1 = vcmask 3072   ;;  %vm161_vm2 = vcmask 44064  }
   0xd   : > { %s442_s10 = sshll.u32 %s568_s6, 4  ;;  %s443_s11 = sshll.u32 %s568_s6, 5  ;;  %vm204_vm3 = vcmask 19456   ;;  %vm210_vm4 = vcmask 27656  }
   0xe   : > { %s144_s14 = scalar_lea.vmem %s561_s0, %s442_s10  ;;  %s530_s17 = scalar_lea.vmem %s562_s1, %s443_s11 }
   0xf   : > { %v431_v0 = vld [vmem:[%s144_s14 + $0x4] sm:$0x7]  ;;  %v171_v1 = vld [vmem:[%s144_s14] sm:$0x7]  ;;  %168 = vst.msk [vmem:[%s530_s17 + $0xc] sm:$0xf] %vm166_vm0, %v494_v2 }
  0x10   : > { %167 = vst.msk [vmem:[%s530_s17 + $0x4] sm:$0xf] %vm166_vm0, %v494_v2  ;;  %169 = vst.msk [vmem:[%s530_s17 + $0x14] sm:$0xf] %vm166_vm0, %v494_v2  ;;  %214 = vxpose.xlu1.b32.start.end [1/1] (short) (narrow) %v431_v0, 8  ;;  %172 = vxpose.xlu0.b32.start.end [1/1] (short) (narrow) %v171_v1, 8 }
  0x11   : > { %170 = vst.msk [vmem:[%s530_s17 + $0x1c] sm:$0xf] %vm166_vm0, %v494_v2  ;;  %v434_v3 = vld [vmem:[%s144_s14 + $0x8] sm:$0x7]  ;;  %v437_v4 = vld [vmem:[%s144_s14 + $0xc] sm:$0x7] }
  0x12   : > { %158 = vst.msk [vmem:[%s530_s17 + $0x8] sm:$0xf] %vm156_vm1, %v494_v2  ;;  %157 = vst.msk [vmem:[%s530_s17] sm:$0xf] %vm156_vm1, %v494_v2 }
  0x13   : > { %159 = vst.msk [vmem:[%s530_s17 + $0x10] sm:$0xf] %vm156_vm1, %v494_v2  ;;  %160 = vst.msk [vmem:[%s530_s17 + $0x18] sm:$0xf] %vm156_vm1, %v494_v2 }
  0x14   : > { %163 = vst.msk [vmem:[%s530_s17 + $0x8] sm:$0xf] %vm161_vm2, %v494_v2  ;;  %162 = vst.msk [vmem:[%s530_s17] sm:$0xf] %vm161_vm2, %v494_v2  ;;  %255 = vxpose.xlu1.b32.start.end [1/1] (short) (narrow) %v434_v3, 8  ;;  %296 = vxpose.xlu0.b32.start.end [1/1] (short) (narrow) %v437_v4, 8 }
  0x15   : > { %164 = vst.msk [vmem:[%s530_s17 + $0x10] sm:$0xf] %vm161_vm2, %v494_v2  ;;  %165 = vst.msk [vmem:[%s530_s17 + $0x18] sm:$0xf] %vm161_vm2, %v494_v2 }
  0x8c   : > { %v230_v5 = vpop.trf.xlu1  ;;  %v188_v6 = vpop.trf.xlu0 }
  0x8d   : > { %432 = vst.msk [vmem:[%s530_s17 + $0xc] sm:$0xf] %vm204_vm3, %v230_v5  ;;  %205 = vst.msk [vmem:[%s530_s17 + $0x4] sm:$0xf] %vm204_vm3, %v188_v6  ;;  %249 = vrot.lane.b32.xlu1 %v230_v5, %s495_s18  ;;  %207 = vrot.lane.b32.xlu0 %v188_v6, %s495_s18 }
  0x90   : > { %v271_v7 = vpop.trf.xlu1  ;;  %v312_v8 = vpop.trf.xlu0 }
  0x91   : > { %435 = vst.msk [vmem:[%s530_s17 + $0x14] sm:$0xf] %vm204_vm3, %v271_v7  ;;  %438 = vst.msk [vmem:[%s530_s17 + $0x1c] sm:$0xf] %vm204_vm3, %v312_v8  ;;  %290 = vrot.lane.b32.xlu0 %v271_v7, %s495_s18  ;;  %331 = vrot.lane.b32.xlu1 %v312_v8, %s495_s18 }
  0xff   : > { %v250_v9 = vpop.permute.xlu1 %249  ;;  %v208_v10 = vpop.permute.xlu0 %207 }
 0x100   : > { %433 = vst.msk [vmem:[%s530_s17 + $0x8] sm:$0xf] %vm210_vm4, %v250_v9  ;;  %211 = vst.msk [vmem:[%s530_s17] sm:$0xf] %vm210_vm4, %v208_v10 }
 0x103   : > { %v332_v11 = vpop.permute.xlu1 %331  ;;  %v291_v12 = vpop.permute.xlu0 %290 }
 0x104   : > { %439 = vst.msk [vmem:[%s530_s17 + $0x18] sm:$0xf] %vm210_vm4, %v332_v11  ;;  %436 = vst.msk [vmem:[%s530_s17 + $0x10] sm:$0xf] %vm210_vm4, %v291_v12 }
 0x105 PF: > { %s11_s8 = sadd.s32 1, %s492_s8   ;;  %s563_s6 = smov %s488_s7 }
 0x106   : > { %p8_p5 = scmp.ge.s32.totalorder %s11_s8, 4   ;;  %s564_s7 = smov %s566_s9 }
 0x108   :  { %10 = sbr.rel (!%p8_p5) target bundleno = 2 (0x2), region = 60 }

</bundles_post_ra>
